<compile_context>
chip_gen: v7x
topology: tpu7x:2x2x1
jax: 0.10.0
libtpu: 0.0.40
codegen_flags: <defaults>
</compile_context>

<pallas_src>
import functools

import jax
import jax.numpy as jnp
from jax.experimental import pallas as pl
from jax.experimental.pallas import tpu as pltpu

# cfg constants from AdvancedEAST cfg.py
EPS = 1e-4
LAMBDA_INSIDE = 4.0
LAMBDA_CODE = 1.0
LAMBDA_COORD = 1.0

_SUB = 8          # sub-chunk rows = one f32 vreg of sublanes
_MAX_ROWS = 512   # max rows-of-128 per grid block (v5e scoped-VMEM safe)
_NUM_TERMS = 9    # partial sums produced per pixel
_ACC_ROWS = 16    # accumulator rows (>= _NUM_TERMS, multiple of 8)


def _loss_kernel(yt_ref, yp_ref, out_ref, *, tr, hw, needs_mask, unroll):
    """Per-sample loss partial sums.

    yt_ref / yp_ref : (7, tr, 128) f32 blocks of one sample's pixel stream.
    out_ref         : (_ACC_ROWS, 128) per-sample per-lane partial sums.
      rows 0..8 = [sum(lab), sum(lab*log(p+eps)), sum((1-lab)*log(1-p+eps)),
                   sum(vlab0), sum(pw*pos_c), sum(pw*neg_c), sum(pw),
                   sum(smooth_l1/n_q*vw), sum(vw)]
    """

    @pl.when(pl.program_id(1) == 0)
    def _init():
        out_ref[...] = jnp.zeros_like(out_ref)

    def smooth_l1(h, t):
        ad = jnp.abs(h - t)
        return jnp.where(ad < 1.0, 0.5 * ad * ad, ad - 0.5)

    def terms(r0, nr):
        # ---- per-channel (nr, 128) slabs (full-lane vregs) ----
        lab   = yt_ref[0, pl.ds(r0, nr), :]
        vlab0 = yt_ref[1, pl.ds(r0, nr), :]
        vlab1 = yt_ref[2, pl.ds(r0, nr), :]
        gt0   = yt_ref[3, pl.ds(r0, nr), :]
        gt1   = yt_ref[4, pl.ds(r0, nr), :]
        gt2   = yt_ref[5, pl.ds(r0, nr), :]
        gt3   = yt_ref[6, pl.ds(r0, nr), :]
        logit = yp_ref[0, pl.ds(r0, nr), :]
        vlog0 = yp_ref[1, pl.ds(r0, nr), :]
        vlog1 = yp_ref[2, pl.ds(r0, nr), :]
        gh0   = yp_ref[3, pl.ds(r0, nr), :]
        gh1   = yp_ref[4, pl.ds(r0, nr), :]
        gh2   = yp_ref[5, pl.ds(r0, nr), :]
        gh3   = yp_ref[6, pl.ds(r0, nr), :]

        # ---- inside score loss: fused sigmoid/log (binary {0,1} labels,
        #      1 - sigmoid(x) == sigmoid(-x)) ----
        lq_in = jnp.log(jax.nn.sigmoid((2.0 * lab - 1.0) * logit) + EPS)
        t1 = lab * lq_in                       # labels * log(p + eps)
        t2 = (1.0 - lab) * lq_in               # (1-labels) * log(1-p + eps)
        if needs_mask:
            # Only the zero-padded tail would leak (lab=0, logit=0 -> log 0.5).
            base = (pl.program_id(1) * tr + r0) * 128
            rows = jax.lax.broadcasted_iota(jnp.int32, (nr, 128), 0)
            lanes = jax.lax.broadcasted_iota(jnp.int32, (nr, 128), 1)
            t2 = t2 * ((base + rows * 128 + lanes) < hw).astype(jnp.float32)

        # ---- side vertex code loss (same sign fusion on both channels) ----
        lq0 = jnp.log(jax.nn.sigmoid((2.0 * vlab0 - 1.0) * vlog0) + EPS)
        lq1 = jnp.log(jax.nn.sigmoid((2.0 * vlab1 - 1.0) * vlog1) + EPS)
        pos_c = vlab0 * lq0 + vlab1 * lq1
        neg_c = (1.0 - vlab0) * lq0 + (1.0 - vlab1) * lq1
        pw = (lab == 1.0).astype(jnp.float32)          # positive_weights

        # ---- side vertex coord loss (smooth L1 / quad_norm) ----
        vw = (vlab0 == 1.0).astype(jnp.float32)        # vertex_weights
        dqx = gt0 - gt2
        dqy = gt1 - gt3
        n_q = jnp.sqrt(dqx * dqx + dqy * dqy) * 4.0 + EPS
        sl1 = (smooth_l1(gh0, gt0) + smooth_l1(gh1, gt1)
               + smooth_l1(gh2, gt2) + smooth_l1(gh3, gt3))
        coord_pix = sl1 * pl.reciprocal(n_q, approx=True) * vw

        return (lab, t1, t2, vlab0, pw * pos_c, pw * neg_c, pw, coord_pix, vw)

    n_full = tr // _SUB
    rem = tr - n_full * _SUB

    parts = [jnp.zeros((1, 128), jnp.float32)] * _NUM_TERMS

    if n_full > 0:
        # Single-pass 8-row chunking: inputs + intermediates + nine carried
        # (8,128) accumulators all fit in the vreg file (no VMEM spill passes).
        def body(s, carry):
            r0 = pl.multiple_of(s * _SUB, _SUB)
            return tuple(c + t for c, t in zip(carry, terms(r0, _SUB)))

        carry0 = tuple(jnp.zeros((_SUB, 128), jnp.float32)
                       for _ in range(_NUM_TERMS))
        carry = jax.lax.fori_loop(0, n_full, body, carry0, unroll=unroll)
        parts = [p + jnp.sum(c, axis=0, keepdims=True)
                 for p, c in zip(parts, carry)]

    if rem > 0:  # static tail sub-chunk when tr is not a multiple of 8
        tail = terms(n_full * _SUB, rem)
        parts = [p + jnp.sum(t, axis=0, keepdims=True)
                 for p, t in zip(parts, tail)]

    # Nine (1,128) RMWs per grid step only (not per sub-chunk).
    for q in range(_NUM_TERMS):
        out_ref[q:q + 1, :] += parts[q]


def quad_loss_pallas(y_true, y_pred):
    """AdvancedEAST quad_loss forward.

    y_true, y_pred: (N, 7, H, W) float32 (PyTorch NCHW convention).
    Returns (total_loss, (inside_score_loss, side_vertex_code_loss,
                          side_vertex_coord_loss)).
    """
    N, C, H, W = y_true.shape
    assert C == 7 and y_pred.shape == y_true.shape
    HW = H * W
    P = N * HW

    rows_raw = -(-HW // 128)              # rows of 128 lanes per sample
    if rows_raw <= _MAX_ROWS:
        tr, steps = rows_raw, 1           # full-dim block (no 8-multiple need)
    else:
        tr = _MAX_ROWS
        steps = -(-rows_raw // tr)
    r_pad = tr * steps
    hw_pad = r_pad * 128
    needs_mask = hw_pad != HW

    def prep(x):
        # Pure reshape when HW % 128 == 0 (zero data movement); otherwise only
        # a per-sample tail pad of the pixel axis (no transpose, one copy).
        x = x.astype(jnp.float32).reshape(N, C, HW)
        if needs_mask:
            x = jnp.pad(x, ((0, 0), (0, 0), (0, hw_pad - HW)))
        return x.reshape(N, C, r_pad, 128)

    yt = prep(y_true)
    yp = prep(y_pred)

    kernel = functools.partial(
        _loss_kernel, tr=tr, hw=HW, needs_mask=needs_mask,
        unroll=(tr // _SUB) <= 8)

    pixels = N * r_pad * 128
    cost = pl.CostEstimate(
        flops=70 * pixels,
        transcendentals=8 * pixels,
        bytes_accessed=2 * C * 4 * pixels + N * _ACC_ROWS * 128 * 4)

    out = pl.pallas_call(
        kernel,
        out_shape=jax.ShapeDtypeStruct((N, _ACC_ROWS, 128), jnp.float32),
        grid_spec=pltpu.PrefetchScalarGridSpec(
            num_scalar_prefetch=0,
            grid=(N, steps),
            in_specs=[
                pl.BlockSpec((None, C, tr, 128), lambda n, i: (n, 0, i, 0)),
                pl.BlockSpec((None, C, tr, 128), lambda n, i: (n, 0, i, 0)),
            ],
            out_specs=pl.BlockSpec((None, _ACC_ROWS, 128),
                                   lambda n, i: (n, 0, 0)),
        ),
        compiler_params=pltpu.CompilerParams(
            dimension_semantics=("parallel", "arbitrary")),
        cost_estimate=cost,
    )(yt, yp)

    # Cross-lane + cross-sample reduction of the tiny accumulator in plain JAX.
    sums = jnp.sum(out, axis=(0, 2))
    s_lab, s_a, s_b = sums[0], sums[1], sums[2]
    s_v1, s_pos, s_neg, s_pw = sums[3], sums[4], sums[5], sums[6]
    s_coord, s_vw = sums[7], sums[8]

    n = jnp.float32(P)                    # number of elements of y_true[:, :1]
    mean_labels = s_lab / n
    beta = 1.0 - mean_labels
    inside = -(beta * s_a + (1.0 - beta) * s_b) / n * LAMBDA_INSIDE
    vertex_beta = 1.0 - (s_v1 / n) / (mean_labels + EPS)
    code = (-vertex_beta * s_pos
            - (1.0 - vertex_beta) * s_neg) / (s_pw + EPS) * LAMBDA_CODE
    coord = s_coord / (s_vw + EPS) * LAMBDA_COORD
    # TODO(synk): the PyTorch forward print()s the three sub-losses (host I/O);
    # they are returned here instead of printed.
    return inside + code + coord, (inside, code, coord)


def quad_loss_ref(y_true, y_pred):
    """Pure-JAX reference reproducing the PyTorch code verbatim."""
    logits = y_pred[:, :1]
    labels = y_true[:, :1]
    beta = 1.0 - jnp.mean(labels)
    predicts = jax.nn.sigmoid(logits)
    inside = jnp.mean(-(beta * labels * jnp.log(predicts + EPS)
                        + (1.0 - beta) * (1.0 - labels)
                        * jnp.log(1.0 - predicts + EPS)))
    inside = inside * LAMBDA_INSIDE

    v_logits = y_pred[:, 1:3]
    v_labels = y_true[:, 1:3]
    vertex_beta = 1.0 - jnp.mean(y_true[:, 1:2]) / (jnp.mean(labels) + EPS)
    vp = jax.nn.sigmoid(v_logits)
    pos = -vertex_beta * v_labels * jnp.log(vp + EPS)
    neg = -(1.0 - vertex_beta) * (1.0 - v_labels) * jnp.log(1.0 - vp + EPS)
    pw = (y_true[:, 0] == 1.0).astype(jnp.float32)
    code = jnp.sum(jnp.sum(pos + neg, axis=1) * pw) / (jnp.sum(pw) + EPS)
    code = code * LAMBDA_CODE

    g_hat = y_pred[:, 3:]
    g_true = y_true[:, 3:]
    vw = (y_true[:, 1] == 1.0).astype(jnp.float32)
    t = jnp.transpose(g_true, (0, 2, 3, 1)).reshape(-1, 2, 2)
    diff = t[:, 0, :] - t[:, 1, :]
    dist = jnp.sqrt(jnp.sum(diff ** 2, axis=-1)) * 4.0 + EPS
    n_q = dist.reshape(vw.shape)
    ad = jnp.abs(g_hat - g_true)
    sl1 = jnp.sum(jnp.where(ad < 1.0, 0.5 * ad * ad, ad - 0.5), axis=1) / n_q * vw
    coord = jnp.sum(sl1) / (jnp.sum(vw) + EPS) * LAMBDA_COORD
    return inside + code + coord


if __name__ == "__main__":
    root = jax.random.PRNGKey(0)

    def make_case(key, N, H, W):
        k1, k2, k3 = jax.random.split(key, 3)
        # Ground truth: channels 0..2 are {0,1} maps, channels 3..6 geo offsets.
        cls = jax.random.bernoulli(k1, p=0.3,
                                   shape=(N, 3, H, W)).astype(jnp.float32)
        geo = jax.random.normal(k2, (N, 4, H, W), jnp.float32) * 2.0
        y_true = jnp.concatenate([cls, geo], axis=1)
        y_pred = jax.random.normal(k3, (N, 7, H, W), jnp.float32)
        return y_true, y_pred

    loss_fn = jax.jit(quad_loss_pallas)

    # (N, H, W) cases covering: aligned tail-chunk path, padded+masked path,
    # fully-unrolled inner loop, rolled inner loop.
    cases = [(2, 16, 16), (2, 24, 24), (1, 64, 64), (1, 96, 96)]
    keys = jax.random.split(root, len(cases))
    for key, (N, H, W) in zip(keys, cases):
        y_true, y_pred = make_case(key, N, H, W)
        total, _parts = loss_fn(y_true, y_pred)
        total = jax.block_until_ready(total)
        ref = jax.block_until_ready(quad_loss_ref(y_true, y_pred))
        # Tolerance reflects EUP transcendentals + approx reciprocal in-kernel.
        assert jnp.allclose(total, ref, rtol=2e-3, atol=1e-4), (
            (N, H, W), float(total), float(ref))
    print("KERNEL_OK")
</pallas_src>

<mosaic_0001>
module attributes {stable_mosaic.version = 11 : i64} {
  func.func @_loss_kernel(%arg0: i32, %arg1: i32, %arg2: memref<1x7x2x128xf32, #tpu.memory_space<vmem>>, %arg3: memref<1x7x2x128xf32, #tpu.memory_space<vmem>>, %arg4: memref<1x16x128xf32, #tpu.memory_space<vmem>>) attributes {dimension_semantics = [#tpu.dimension_semantics<parallel>, #tpu.dimension_semantics<arbitrary>], iteration_bounds = array<i64: 2, 1>, scalar_prefetch = 0 : i64, scratch_operands = 0 : i64, tpu.core_type = #tpu.core_type<tc>, window_params = [{transform_indices = @transform_0, window_bounds = array<i64: 1, 7, 2, 128>}, {transform_indices = @transform_1, window_bounds = array<i64: 1, 7, 2, 128>}, {transform_indices = @transform_2, window_bounds = array<i64: 1, 16, 128>}]} {
    %c0_i32 = arith.constant 0 : i32
    %0 = arith.cmpi eq, %arg1, %c0_i32 : i32
    %1 = arith.extui %0 : i1 to i32
    %c0_i32_0 = arith.constant 0 : i32
    %2 = arith.cmpi ne, %1, %c0_i32_0 : i32
    scf.if %2 {
      %cst_142 = arith.constant 0.000000e+00 : f32
      %232 = vector.broadcast %cst_142 : f32 to vector<16x128xf32>
      %c0_143 = arith.constant 0 : index
      %c0_144 = arith.constant 0 : index
      %c0_145 = arith.constant 0 : index
      %233 = vector.load %arg4[%c0_143, %c0_144, %c0_145] : memref<1x16x128xf32, #tpu.memory_space<vmem>>, vector<1x16x128xf32>
      %234 = vector.shape_cast %233 : vector<1x16x128xf32> to vector<16x128xf32>
      %235 = vector.shape_cast %232 : vector<16x128xf32> to vector<1x16x128xf32>
      tpu.vector_store %arg4[%c0_143, %c0_144, %c0_145], %235 {strides = array<i32>} : memref<1x16x128xf32, #tpu.memory_space<vmem>>, vector<1x16x128xf32>,
    } else {
    }
    %cst = arith.constant 0.000000e+00 : f32
    %3 = vector.broadcast %cst : f32 to vector<1x128xf32>
    %c0 = arith.constant 0 : index
    %c0_1 = arith.constant 0 : index
    %c0_2 = arith.constant 0 : index
    %c0_3 = arith.constant 0 : index
    %4 = vector.load %arg2[%c0, %c0_1, %c0_2, %c0_3] : memref<1x7x2x128xf32, #tpu.memory_space<vmem>>, vector<1x1x2x128xf32>
    %5 = vector.shape_cast %4 : vector<1x1x2x128xf32> to vector<2x128xf32>
    %c0_4 = arith.constant 0 : index
    %c1 = arith.constant 1 : index
    %c0_5 = arith.constant 0 : index
    %c0_6 = arith.constant 0 : index
    %6 = vector.load %arg2[%c0_4, %c1, %c0_5, %c0_6] : memref<1x7x2x128xf32, #tpu.memory_space<vmem>>, vector<1x1x2x128xf32>
    %7 = vector.shape_cast %6 : vector<1x1x2x128xf32> to vector<2x128xf32>
    %c0_7 = arith.constant 0 : index
    %c2 = arith.constant 2 : index
    %c0_8 = arith.constant 0 : index
    %c0_9 = arith.constant 0 : index
    %8 = vector.load %arg2[%c0_7, %c2, %c0_8, %c0_9] : memref<1x7x2x128xf32, #tpu.memory_space<vmem>>, vector<1x1x2x128xf32>
    %9 = vector.shape_cast %8 : vector<1x1x2x128xf32> to vector<2x128xf32>
    %c0_10 = arith.constant 0 : index
    %c3 = arith.constant 3 : index
    %c0_11 = arith.constant 0 : index
    %c0_12 = arith.constant 0 : index
    %10 = vector.load %arg2[%c0_10, %c3, %c0_11, %c0_12] : memref<1x7x2x128xf32, #tpu.memory_space<vmem>>, vector<1x1x2x128xf32>
    %11 = vector.shape_cast %10 : vector<1x1x2x128xf32> to vector<2x128xf32>
    %c0_13 = arith.constant 0 : index
    %c4 = arith.constant 4 : index
    %c0_14 = arith.constant 0 : index
    %c0_15 = arith.constant 0 : index
    %12 = vector.load %arg2[%c0_13, %c4, %c0_14, %c0_15] : memref<1x7x2x128xf32, #tpu.memory_space<vmem>>, vector<1x1x2x128xf32>
    %13 = vector.shape_cast %12 : vector<1x1x2x128xf32> to vector<2x128xf32>
    %c0_16 = arith.constant 0 : index
    %c5 = arith.constant 5 : index
    %c0_17 = arith.constant 0 : index
    %c0_18 = arith.constant 0 : index
    %14 = vector.load %arg2[%c0_16, %c5, %c0_17, %c0_18] : memref<1x7x2x128xf32, #tpu.memory_space<vmem>>, vector<1x1x2x128xf32>
    %15 = vector.shape_cast %14 : vector<1x1x2x128xf32> to vector<2x128xf32>
    %c0_19 = arith.constant 0 : index
    %c6 = arith.constant 6 : index
    %c0_20 = arith.constant 0 : index
    %c0_21 = arith.constant 0 : index
    %16 = vector.load %arg2[%c0_19, %c6, %c0_20, %c0_21] : memref<1x7x2x128xf32, #tpu.memory_space<vmem>>, vector<1x1x2x128xf32>
    %17 = vector.shape_cast %16 : vector<1x1x2x128xf32> to vector<2x128xf32>
    %c0_22 = arith.constant 0 : index
    %c0_23 = arith.constant 0 : index
    %c0_24 = arith.constant 0 : index
    %c0_25 = arith.constant 0 : index
    %18 = vector.load %arg3[%c0_22, %c0_23, %c0_24, %c0_25] : memref<1x7x2x128xf32, #tpu.memory_space<vmem>>, vector<1x1x2x128xf32>
    %19 = vector.shape_cast %18 : vector<1x1x2x128xf32> to vector<2x128xf32>
    %c0_26 = arith.constant 0 : index
    %c1_27 = arith.constant 1 : index
    %c0_28 = arith.constant 0 : index
    %c0_29 = arith.constant 0 : index
    %20 = vector.load %arg3[%c0_26, %c1_27, %c0_28, %c0_29] : memref<1x7x2x128xf32, #tpu.memory_space<vmem>>, vector<1x1x2x128xf32>
    %21 = vector.shape_cast %20 : vector<1x1x2x128xf32> to vector<2x128xf32>
    %c0_30 = arith.constant 0 : index
    %c2_31 = arith.constant 2 : index
    %c0_32 = arith.constant 0 : index
    %c0_33 = arith.constant 0 : index
    %22 = vector.load %arg3[%c0_30, %c2_31, %c0_32, %c0_33] : memref<1x7x2x128xf32, #tpu.memory_space<vmem>>, vector<1x1x2x128xf32>
    %23 = vector.shape_cast %22 : vector<1x1x2x128xf32> to vector<2x128xf32>
    %c0_34 = arith.constant 0 : index
    %c3_35 = arith.constant 3 : index
    %c0_36 = arith.constant 0 : index
    %c0_37 = arith.constant 0 : index
    %24 = vector.load %arg3[%c0_34, %c3_35, %c0_36, %c0_37] : memref<1x7x2x128xf32, #tpu.memory_space<vmem>>, vector<1x1x2x128xf32>
    %25 = vector.shape_cast %24 : vector<1x1x2x128xf32> to vector<2x128xf32>
    %c0_38 = arith.constant 0 : index
    %c4_39 = arith.constant 4 : index
    %c0_40 = arith.constant 0 : index
    %c0_41 = arith.constant 0 : index
    %26 = vector.load %arg3[%c0_38, %c4_39, %c0_40, %c0_41] : memref<1x7x2x128xf32, #tpu.memory_space<vmem>>, vector<1x1x2x128xf32>
    %27 = vector.shape_cast %26 : vector<1x1x2x128xf32> to vector<2x128xf32>
    %c0_42 = arith.constant 0 : index
    %c5_43 = arith.constant 5 : index
    %c0_44 = arith.constant 0 : index
    %c0_45 = arith.constant 0 : index
    %28 = vector.load %arg3[%c0_42, %c5_43, %c0_44, %c0_45] : memref<1x7x2x128xf32, #tpu.memory_space<vmem>>, vector<1x1x2x128xf32>
    %29 = vector.shape_cast %28 : vector<1x1x2x128xf32> to vector<2x128xf32>
    %c0_46 = arith.constant 0 : index
    %c6_47 = arith.constant 6 : index
    %c0_48 = arith.constant 0 : index
    %c0_49 = arith.constant 0 : index
    %30 = vector.load %arg3[%c0_46, %c6_47, %c0_48, %c0_49] : memref<1x7x2x128xf32, #tpu.memory_space<vmem>>, vector<1x1x2x128xf32>
    %31 = vector.shape_cast %30 : vector<1x1x2x128xf32> to vector<2x128xf32>
    %cst_50 = arith.constant 2.000000e+00 : f32
    %32 = vector.broadcast %cst_50 : f32 to vector<2x128xf32>
    %33 = arith.mulf %32, %5 : vector<2x128xf32>
    %cst_51 = arith.constant 1.000000e+00 : f32
    %34 = vector.broadcast %cst_51 : f32 to vector<2x128xf32>
    %35 = arith.subf %33, %34 : vector<2x128xf32>
    %36 = arith.mulf %35, %19 : vector<2x128xf32>
    %37 = arith.negf %36 : vector<2x128xf32>
    %38 = math.exp %37 : vector<2x128xf32>
    %cst_52 = arith.constant 1.000000e+00 : f32
    %39 = vector.broadcast %cst_52 : f32 to vector<2x128xf32>
    %40 = arith.addf %39, %38 : vector<2x128xf32>
    %41 = arith.divf %39, %40 : vector<2x128xf32>
    %cst_53 = arith.constant 9.99999974E-5 : f32
    %42 = vector.broadcast %cst_53 : f32 to vector<2x128xf32>
    %43 = arith.addf %41, %42 : vector<2x128xf32>
    %44 = math.log %43 : vector<2x128xf32>
    %45 = arith.mulf %5, %44 : vector<2x128xf32>
    %cst_54 = arith.constant 1.000000e+00 : f32
    %46 = vector.broadcast %cst_54 : f32 to vector<2x128xf32>
    %47 = arith.subf %46, %5 : vector<2x128xf32>
    %48 = arith.mulf %47, %44 : vector<2x128xf32>
    %cst_55 = arith.constant 2.000000e+00 : f32
    %49 = vector.broadcast %cst_55 : f32 to vector<2x128xf32>
    %50 = arith.mulf %49, %7 : vector<2x128xf32>
    %cst_56 = arith.constant 1.000000e+00 : f32
    %51 = vector.broadcast %cst_56 : f32 to vector<2x128xf32>
    %52 = arith.subf %50, %51 : vector<2x128xf32>
    %53 = arith.mulf %52, %21 : vector<2x128xf32>
    %54 = arith.negf %53 : vector<2x128xf32>
    %55 = math.exp %54 : vector<2x128xf32>
    %cst_57 = arith.constant 1.000000e+00 : f32
    %56 = vector.broadcast %cst_57 : f32 to vector<2x128xf32>
    %57 = arith.addf %56, %55 : vector<2x128xf32>
    %58 = arith.divf %56, %57 : vector<2x128xf32>
    %cst_58 = arith.constant 9.99999974E-5 : f32
    %59 = vector.broadcast %cst_58 : f32 to vector<2x128xf32>
    %60 = arith.addf %58, %59 : vector<2x128xf32>
    %61 = math.log %60 : vector<2x128xf32>
    %cst_59 = arith.constant 2.000000e+00 : f32
    %62 = vector.broadcast %cst_59 : f32 to vector<2x128xf32>
    %63 = arith.mulf %62, %9 : vector<2x128xf32>
    %cst_60 = arith.constant 1.000000e+00 : f32
    %64 = vector.broadcast %cst_60 : f32 to vector<2x128xf32>
    %65 = arith.subf %63, %64 : vector<2x128xf32>
    %66 = arith.mulf %65, %23 : vector<2x128xf32>
    %67 = arith.negf %66 : vector<2x128xf32>
    %68 = math.exp %67 : vector<2x128xf32>
    %cst_61 = arith.constant 1.000000e+00 : f32
    %69 = vector.broadcast %cst_61 : f32 to vector<2x128xf32>
    %70 = arith.addf %69, %68 : vector<2x128xf32>
    %71 = arith.divf %69, %70 : vector<2x128xf32>
    %cst_62 = arith.constant 9.99999974E-5 : f32
    %72 = vector.broadcast %cst_62 : f32 to vector<2x128xf32>
    %73 = arith.addf %71, %72 : vector<2x128xf32>
    %74 = math.log %73 : vector<2x128xf32>
    %75 = arith.mulf %7, %61 : vector<2x128xf32>
    %76 = arith.mulf %9, %74 : vector<2x128xf32>
    %77 = arith.addf %75, %76 : vector<2x128xf32>
    %cst_63 = arith.constant 1.000000e+00 : f32
    %78 = vector.broadcast %cst_63 : f32 to vector<2x128xf32>
    %79 = arith.subf %78, %7 : vector<2x128xf32>
    %80 = arith.mulf %79, %61 : vector<2x128xf32>
    %cst_64 = arith.constant 1.000000e+00 : f32
    %81 = vector.broadcast %cst_64 : f32 to vector<2x128xf32>
    %82 = arith.subf %81, %9 : vector<2x128xf32>
    %83 = arith.mulf %82, %74 : vector<2x128xf32>
    %84 = arith.addf %80, %83 : vector<2x128xf32>
    %cst_65 = arith.constant 1.000000e+00 : f32
    %85 = vector.broadcast %cst_65 : f32 to vector<2x128xf32>
    %86 = arith.cmpf oeq, %5, %85 : vector<2x128xf32>
    %87 = arith.extui %86 : vector<2x128xi1> to vector<2x128xi32>
    %88 = arith.sitofp %87 : vector<2x128xi32> to vector<2x128xf32>
    %cst_66 = arith.constant 1.000000e+00 : f32
    %89 = vector.broadcast %cst_66 : f32 to vector<2x128xf32>
    %90 = arith.cmpf oeq, %7, %89 : vector<2x128xf32>
    %91 = arith.extui %90 : vector<2x128xi1> to vector<2x128xi32>
    %92 = arith.sitofp %91 : vector<2x128xi32> to vector<2x128xf32>
    %93 = arith.subf %11, %15 : vector<2x128xf32>
    %94 = arith.subf %13, %17 : vector<2x128xf32>
    %95 = arith.mulf %93, %93 : vector<2x128xf32>
    %96 = arith.mulf %94, %94 : vector<2x128xf32>
    %97 = arith.addf %95, %96 : vector<2x128xf32>
    %98 = math.sqrt %97 : vector<2x128xf32>
    %cst_67 = arith.constant 4.000000e+00 : f32
    %99 = vector.broadcast %cst_67 : f32 to vector<2x128xf32>
    %100 = arith.mulf %98, %99 : vector<2x128xf32>
    %cst_68 = arith.constant 9.99999974E-5 : f32
    %101 = vector.broadcast %cst_68 : f32 to vector<2x128xf32>
    %102 = arith.addf %100, %101 : vector<2x128xf32>
    %103 = arith.subf %25, %11 : vector<2x128xf32>
    %104 = math.absf %103 : vector<2x128xf32>
    %cst_69 = arith.constant 1.000000e+00 : f32
    %105 = vector.broadcast %cst_69 : f32 to vector<2x128xf32>
    %106 = arith.cmpf olt, %104, %105 : vector<2x128xf32>
    %cst_70 = arith.constant 5.000000e-01 : f32
    %107 = vector.broadcast %cst_70 : f32 to vector<2x128xf32>
    %108 = arith.mulf %107, %104 : vector<2x128xf32>
    %109 = arith.mulf %108, %104 : vector<2x128xf32>
    %cst_71 = arith.constant 5.000000e-01 : f32
    %110 = vector.broadcast %cst_71 : f32 to vector<2x128xf32>
    %111 = arith.subf %104, %110 : vector<2x128xf32>
    %112 = arith.select %106, %109, %111 : vector<2x128xi1>, vector<2x128xf32>
    %113 = arith.subf %27, %13 : vector<2x128xf32>
    %114 = math.absf %113 : vector<2x128xf32>
    %cst_72 = arith.constant 1.000000e+00 : f32
    %115 = vector.broadcast %cst_72 : f32 to vector<2x128xf32>
    %116 = arith.cmpf olt, %114, %115 : vector<2x128xf32>
    %cst_73 = arith.constant 5.000000e-01 : f32
    %117 = vector.broadcast %cst_73 : f32 to vector<2x128xf32>
    %118 = arith.mulf %117, %114 : vector<2x128xf32>
    %119 = arith.mulf %118, %114 : vector<2x128xf32>
    %cst_74 = arith.constant 5.000000e-01 : f32
    %120 = vector.broadcast %cst_74 : f32 to vector<2x128xf32>
    %121 = arith.subf %114, %120 : vector<2x128xf32>
    %122 = arith.select %116, %119, %121 : vector<2x128xi1>, vector<2x128xf32>
    %123 = arith.addf %112, %122 : vector<2x128xf32>
    %124 = arith.subf %29, %15 : vector<2x128xf32>
    %125 = math.absf %124 : vector<2x128xf32>
    %cst_75 = arith.constant 1.000000e+00 : f32
    %126 = vector.broadcast %cst_75 : f32 to vector<2x128xf32>
    %127 = arith.cmpf olt, %125, %126 : vector<2x128xf32>
    %cst_76 = arith.constant 5.000000e-01 : f32
    %128 = vector.broadcast %cst_76 : f32 to vector<2x128xf32>
    %129 = arith.mulf %128, %125 : vector<2x128xf32>
    %130 = arith.mulf %129, %125 : vector<2x128xf32>
    %cst_77 = arith.constant 5.000000e-01 : f32
    %131 = vector.broadcast %cst_77 : f32 to vector<2x128xf32>
    %132 = arith.subf %125, %131 : vector<2x128xf32>
    %133 = arith.select %127, %130, %132 : vector<2x128xi1>, vector<2x128xf32>
    %134 = arith.addf %123, %133 : vector<2x128xf32>
    %135 = arith.subf %31, %17 : vector<2x128xf32>
    %136 = math.absf %135 : vector<2x128xf32>
    %cst_78 = arith.constant 1.000000e+00 : f32
    %137 = vector.broadcast %cst_78 : f32 to vector<2x128xf32>
    %138 = arith.cmpf olt, %136, %137 : vector<2x128xf32>
    %cst_79 = arith.constant 5.000000e-01 : f32
    %139 = vector.broadcast %cst_79 : f32 to vector<2x128xf32>
    %140 = arith.mulf %139, %136 : vector<2x128xf32>
    %141 = arith.mulf %140, %136 : vector<2x128xf32>
    %cst_80 = arith.constant 5.000000e-01 : f32
    %142 = vector.broadcast %cst_80 : f32 to vector<2x128xf32>
    %143 = arith.subf %136, %142 : vector<2x128xf32>
    %144 = arith.select %138, %141, %143 : vector<2x128xi1>, vector<2x128xf32>
    %145 = arith.addf %134, %144 : vector<2x128xf32>
    %146 = tpu.reciprocal %102 {approx = true} : vector<2x128xf32> -> vector<2x128xf32>
    %147 = arith.mulf %145, %146 : vector<2x128xf32>
    %148 = arith.mulf %147, %92 : vector<2x128xf32>
    %149 = arith.mulf %88, %77 : vector<2x128xf32>
    %150 = arith.mulf %88, %84 : vector<2x128xf32>
    %cst_81 = arith.constant dense<0.000000e+00> : vector<128xf32>
    %151 = vector.multi_reduction <add>, %5, %cst_81 [0] : vector<2x128xf32> to vector<128xf32>
    %152 = vector.shape_cast %151 : vector<128xf32> to vector<1x128xf32>
    %153 = arith.addf %3, %152 : vector<1x128xf32>
    %cst_82 = arith.constant dense<0.000000e+00> : vector<128xf32>
    %154 = vector.multi_reduction <add>, %45, %cst_82 [0] : vector<2x128xf32> to vector<128xf32>
    %155 = vector.shape_cast %154 : vector<128xf32> to vector<1x128xf32>
    %156 = arith.addf %3, %155 : vector<1x128xf32>
    %cst_83 = arith.constant dense<0.000000e+00> : vector<128xf32>
    %157 = vector.multi_reduction <add>, %48, %cst_83 [0] : vector<2x128xf32> to vector<128xf32>
    %158 = vector.shape_cast %157 : vector<128xf32> to vector<1x128xf32>
    %159 = arith.addf %3, %158 : vector<1x128xf32>
    %cst_84 = arith.constant dense<0.000000e+00> : vector<128xf32>
    %160 = vector.multi_reduction <add>, %7, %cst_84 [0] : vector<2x128xf32> to vector<128xf32>
    %161 = vector.shape_cast %160 : vector<128xf32> to vector<1x128xf32>
    %162 = arith.addf %3, %161 : vector<1x128xf32>
    %cst_85 = arith.constant dense<0.000000e+00> : vector<128xf32>
    %163 = vector.multi_reduction <add>, %149, %cst_85 [0] : vector<2x128xf32> to vector<128xf32>
    %164 = vector.shape_cast %163 : vector<128xf32> to vector<1x128xf32>
    %165 = arith.addf %3, %164 : vector<1x128xf32>
    %cst_86 = arith.constant dense<0.000000e+00> : vector<128xf32>
    %166 = vector.multi_reduction <add>, %150, %cst_86 [0] : vector<2x128xf32> to vector<128xf32>
    %167 = vector.shape_cast %166 : vector<128xf32> to vector<1x128xf32>
    %168 = arith.addf %3, %167 : vector<1x128xf32>
    %cst_87 = arith.constant dense<0.000000e+00> : vector<128xf32>
    %169 = vector.multi_reduction <add>, %88, %cst_87 [0] : vector<2x128xf32> to vector<128xf32>
    %170 = vector.shape_cast %169 : vector<128xf32> to vector<1x128xf32>
    %171 = arith.addf %3, %170 : vector<1x128xf32>
    %cst_88 = arith.constant dense<0.000000e+00> : vector<128xf32>
    %172 = vector.multi_reduction <add>, %148, %cst_88 [0] : vector<2x128xf32> to vector<128xf32>
    %173 = vector.shape_cast %172 : vector<128xf32> to vector<1x128xf32>
    %174 = arith.addf %3, %173 : vector<1x128xf32>
    %cst_89 = arith.constant dense<0.000000e+00> : vector<128xf32>
    %175 = vector.multi_reduction <add>, %92, %cst_89 [0] : vector<2x128xf32> to vector<128xf32>
    %176 = vector.shape_cast %175 : vector<128xf32> to vector<1x128xf32>
    %177 = arith.addf %3, %176 : vector<1x128xf32>
    %c0_90 = arith.constant 0 : index
    %c0_91 = arith.constant 0 : index
    %c0_92 = arith.constant 0 : index
    %178 = vector.load %arg4[%c0_90, %c0_91, %c0_92] : memref<1x16x128xf32, #tpu.memory_space<vmem>>, vector<1x1x128xf32>
    %179 = vector.shape_cast %178 : vector<1x1x128xf32> to vector<1x128xf32>
    %180 = arith.addf %179, %153 : vector<1x128xf32>
    %c0_93 = arith.constant 0 : index
    %c0_94 = arith.constant 0 : index
    %c0_95 = arith.constant 0 : index
    %181 = vector.load %arg4[%c0_93, %c0_94, %c0_95] : memref<1x16x128xf32, #tpu.memory_space<vmem>>, vector<1x1x128xf32>
    %182 = vector.shape_cast %181 : vector<1x1x128xf32> to vector<1x128xf32>
    %183 = vector.shape_cast %180 : vector<1x128xf32> to vector<1x1x128xf32>
    tpu.vector_store %arg4[%c0_93, %c0_94, %c0_95], %183 {strides = array<i32>} : memref<1x16x128xf32, #tpu.memory_space<vmem>>, vector<1x1x128xf32>,
    %c0_96 = arith.constant 0 : index
    %c1_97 = arith.constant 1 : index
    %c0_98 = arith.constant 0 : index
    %184 = vector.load %arg4[%c0_96, %c1_97, %c0_98] : memref<1x16x128xf32, #tpu.memory_space<vmem>>, vector<1x1x128xf32>
    %185 = vector.shape_cast %184 : vector<1x1x128xf32> to vector<1x128xf32>
    %186 = arith.addf %185, %156 : vector<1x128xf32>
    %c0_99 = arith.constant 0 : index
    %c1_100 = arith.constant 1 : index
    %c0_101 = arith.constant 0 : index
    %187 = vector.load %arg4[%c0_99, %c1_100, %c0_101] : memref<1x16x128xf32, #tpu.memory_space<vmem>>, vector<1x1x128xf32>
    %188 = vector.shape_cast %187 : vector<1x1x128xf32> to vector<1x128xf32>
    %189 = vector.shape_cast %186 : vector<1x128xf32> to vector<1x1x128xf32>
    tpu.vector_store %arg4[%c0_99, %c1_100, %c0_101], %189 {strides = array<i32>} : memref<1x16x128xf32, #tpu.memory_space<vmem>>, vector<1x1x128xf32>,
    %c0_102 = arith.constant 0 : index
    %c2_103 = arith.constant 2 : index
    %c0_104 = arith.constant 0 : index
    %190 = vector.load %arg4[%c0_102, %c2_103, %c0_104] : memref<1x16x128xf32, #tpu.memory_space<vmem>>, vector<1x1x128xf32>
    %191 = vector.shape_cast %190 : vector<1x1x128xf32> to vector<1x128xf32>
    %192 = arith.addf %191, %159 : vector<1x128xf32>
    %c0_105 = arith.constant 0 : index
    %c2_106 = arith.constant 2 : index
    %c0_107 = arith.constant 0 : index
    %193 = vector.load %arg4[%c0_105, %c2_106, %c0_107] : memref<1x16x128xf32, #tpu.memory_space<vmem>>, vector<1x1x128xf32>
    %194 = vector.shape_cast %193 : vector<1x1x128xf32> to vector<1x128xf32>
    %195 = vector.shape_cast %192 : vector<1x128xf32> to vector<1x1x128xf32>
    tpu.vector_store %arg4[%c0_105, %c2_106, %c0_107], %195 {strides = array<i32>} : memref<1x16x128xf32, #tpu.memory_space<vmem>>, vector<1x1x128xf32>,
    %c0_108 = arith.constant 0 : index
    %c3_109 = arith.constant 3 : index
    %c0_110 = arith.constant 0 : index
    %196 = vector.load %arg4[%c0_108, %c3_109, %c0_110] : memref<1x16x128xf32, #tpu.memory_space<vmem>>, vector<1x1x128xf32>
    %197 = vector.shape_cast %196 : vector<1x1x128xf32> to vector<1x128xf32>
    %198 = arith.addf %197, %162 : vector<1x128xf32>
    %c0_111 = arith.constant 0 : index
    %c3_112 = arith.constant 3 : index
    %c0_113 = arith.constant 0 : index
    %199 = vector.load %arg4[%c0_111, %c3_112, %c0_113] : memref<1x16x128xf32, #tpu.memory_space<vmem>>, vector<1x1x128xf32>
    %200 = vector.shape_cast %199 : vector<1x1x128xf32> to vector<1x128xf32>
    %201 = vector.shape_cast %198 : vector<1x128xf32> to vector<1x1x128xf32>
    tpu.vector_store %arg4[%c0_111, %c3_112, %c0_113], %201 {strides = array<i32>} : memref<1x16x128xf32, #tpu.memory_space<vmem>>, vector<1x1x128xf32>,
    %c0_114 = arith.constant 0 : index
    %c4_115 = arith.constant 4 : index
    %c0_116 = arith.constant 0 : index
    %202 = vector.load %arg4[%c0_114, %c4_115, %c0_116] : memref<1x16x128xf32, #tpu.memory_space<vmem>>, vector<1x1x128xf32>
    %203 = vector.shape_cast %202 : vector<1x1x128xf32> to vector<1x128xf32>
    %204 = arith.addf %203, %165 : vector<1x128xf32>
    %c0_117 = arith.constant 0 : index
    %c4_118 = arith.constant 4 : index
    %c0_119 = arith.constant 0 : index
    %205 = vector.load %arg4[%c0_117, %c4_118, %c0_119] : memref<1x16x128xf32, #tpu.memory_space<vmem>>, vector<1x1x128xf32>
    %206 = vector.shape_cast %205 : vector<1x1x128xf32> to vector<1x128xf32>
    %207 = vector.shape_cast %204 : vector<1x128xf32> to vector<1x1x128xf32>
    tpu.vector_store %arg4[%c0_117, %c4_118, %c0_119], %207 {strides = array<i32>} : memref<1x16x128xf32, #tpu.memory_space<vmem>>, vector<1x1x128xf32>,
    %c0_120 = arith.constant 0 : index
    %c5_121 = arith.constant 5 : index
    %c0_122 = arith.constant 0 : index
    %208 = vector.load %arg4[%c0_120, %c5_121, %c0_122] : memref<1x16x128xf32, #tpu.memory_space<vmem>>, vector<1x1x128xf32>
    %209 = vector.shape_cast %208 : vector<1x1x128xf32> to vector<1x128xf32>
    %210 = arith.addf %209, %168 : vector<1x128xf32>
    %c0_123 = arith.constant 0 : index
    %c5_124 = arith.constant 5 : index
    %c0_125 = arith.constant 0 : index
    %211 = vector.load %arg4[%c0_123, %c5_124, %c0_125] : memref<1x16x128xf32, #tpu.memory_space<vmem>>, vector<1x1x128xf32>
    %212 = vector.shape_cast %211 : vector<1x1x128xf32> to vector<1x128xf32>
    %213 = vector.shape_cast %210 : vector<1x128xf32> to vector<1x1x128xf32>
    tpu.vector_store %arg4[%c0_123, %c5_124, %c0_125], %213 {strides = array<i32>} : memref<1x16x128xf32, #tpu.memory_space<vmem>>, vector<1x1x128xf32>,
    %c0_126 = arith.constant 0 : index
    %c6_127 = arith.constant 6 : index
    %c0_128 = arith.constant 0 : index
    %214 = vector.load %arg4[%c0_126, %c6_127, %c0_128] : memref<1x16x128xf32, #tpu.memory_space<vmem>>, vector<1x1x128xf32>
    %215 = vector.shape_cast %214 : vector<1x1x128xf32> to vector<1x128xf32>
    %216 = arith.addf %215, %171 : vector<1x128xf32>
    %c0_129 = arith.constant 0 : index
    %c6_130 = arith.constant 6 : index
    %c0_131 = arith.constant 0 : index
    %217 = vector.load %arg4[%c0_129, %c6_130, %c0_131] : memref<1x16x128xf32, #tpu.memory_space<vmem>>, vector<1x1x128xf32>
    %218 = vector.shape_cast %217 : vector<1x1x128xf32> to vector<1x128xf32>
    %219 = vector.shape_cast %216 : vector<1x128xf32> to vector<1x1x128xf32>
    tpu.vector_store %arg4[%c0_129, %c6_130, %c0_131], %219 {strides = array<i32>} : memref<1x16x128xf32, #tpu.memory_space<vmem>>, vector<1x1x128xf32>,
    %c0_132 = arith.constant 0 : index
    %c7 = arith.constant 7 : index
    %c0_133 = arith.constant 0 : index
    %220 = vector.load %arg4[%c0_132, %c7, %c0_133] : memref<1x16x128xf32, #tpu.memory_space<vmem>>, vector<1x1x128xf32>
    %221 = vector.shape_cast %220 : vector<1x1x128xf32> to vector<1x128xf32>
    %222 = arith.addf %221, %174 : vector<1x128xf32>
    %c0_134 = arith.constant 0 : index
    %c7_135 = arith.constant 7 : index
    %c0_136 = arith.constant 0 : index
    %223 = vector.load %arg4[%c0_134, %c7_135, %c0_136] : memref<1x16x128xf32, #tpu.memory_space<vmem>>, vector<1x1x128xf32>
    %224 = vector.shape_cast %223 : vector<1x1x128xf32> to vector<1x128xf32>
    %225 = vector.shape_cast %222 : vector<1x128xf32> to vector<1x1x128xf32>
    tpu.vector_store %arg4[%c0_134, %c7_135, %c0_136], %225 {strides = array<i32>} : memref<1x16x128xf32, #tpu.memory_space<vmem>>, vector<1x1x128xf32>,
    %c0_137 = arith.constant 0 : index
    %c8 = arith.constant 8 : index
    %c0_138 = arith.constant 0 : index
    %226 = vector.load %arg4[%c0_137, %c8, %c0_138] : memref<1x16x128xf32, #tpu.memory_space<vmem>>, vector<1x1x128xf32>
    %227 = vector.shape_cast %226 : vector<1x1x128xf32> to vector<1x128xf32>
    %228 = arith.addf %227, %177 : vector<1x128xf32>
    %c0_139 = arith.constant 0 : index
    %c8_140 = arith.constant 8 : index
    %c0_141 = arith.constant 0 : index
    %229 = vector.load %arg4[%c0_139, %c8_140, %c0_141] : memref<1x16x128xf32, #tpu.memory_space<vmem>>, vector<1x1x128xf32>
    %230 = vector.shape_cast %229 : vector<1x1x128xf32> to vector<1x128xf32>
    %231 = vector.shape_cast %228 : vector<1x128xf32> to vector<1x1x128xf32>
    tpu.vector_store %arg4[%c0_139, %c8_140, %c0_141], %231 {strides = array<i32>} : memref<1x16x128xf32, #tpu.memory_space<vmem>>, vector<1x1x128xf32>,
    return
  }
  func.func @transform_0(%arg0: i32, %arg1: i32) -> (i32, i32, i32, i32) {
    %c0_i32 = arith.constant 0 : i32
    %c0_i32_0 = arith.constant 0 : i32
    %c0_i32_1 = arith.constant 0 : i32
    return %arg0, %c0_i32, %arg1, %c0_i32_0 : i32, i32, i32, i32
  }
  func.func @transform_1(%arg0: i32, %arg1: i32) -> (i32, i32, i32, i32) {
    %c0_i32 = arith.constant 0 : i32
    %c0_i32_0 = arith.constant 0 : i32
    %c0_i32_1 = arith.constant 0 : i32
    return %arg0, %c0_i32, %arg1, %c0_i32_0 : i32, i32, i32, i32
  }
  func.func @transform_2(%arg0: i32, %arg1: i32) -> (i32, i32, i32) {
    %c0_i32 = arith.constant 0 : i32
    %c0_i32_0 = arith.constant 0 : i32
    %c0_i32_1 = arith.constant 0 : i32
    return %arg0, %c0_i32, %c0_i32_0 : i32, i32, i32
  }
}

</mosaic_0001>

<bundles_post_ra>
// kernel: quad_loss_pallas.1
= control target key start
LH: loop header
LB: loop body
LE: loop exit
PB: predicated region body
PF: predicated region fallthrough
CT: control target
= control target key end

     0   :  { %s644_s9 = smov 0   ;;  %s646_s10 = smov 0   ;;  %s764_s0 = inlined_call_operand.vmem [shape: f32[2,7,2,128], index: 0, kind: input, shape index: {}]   ;;  %s765_s1 = inlined_call_operand.vmem [shape: f32[2,7,2,128], index: 1, kind: input, shape index: {}]   ;;  %s766_s2 = inlined_call_operand.vmem [shape: f32[2,16,128], index: 2, kind: output, shape index: {}]  }
   0x1   :  { %s648_s11 = smov 0  }
   0x2 LB: > { %s24_s12 = sadd.s32 1, %s622_s10  ;;  %p524_p0 = scmp.ge.s32.totalorder %s626_s11, 1  ;;  %s626_s11 = sphi %s648_s11, %s12_s11   ;;  %s622_s10 = sphi %s646_s10, %s768_s10   ;;  %s618_s9 = sphi %s644_s9, %s767_s9  }
   0x3   : > { %p26_p1 = scmp.ge.s32.totalorder %s24_s12, 2  ;;  %p144_p2 = scmp.lt.s32.totalorder %s626_s11, 3 }
   0x5   : > { %s770_s12 = smov (%p26_p1, %s24_s12), 0  ;;  %p145_p3 = pnand %p524_p0, %p144_p2 }
   0x6   : > { %p177_p4 = scmp.lt.s32.totalorder (!%p145_p3), %s618_s9, 1  ;;  %v628_v0 = vmov (!%p145_p3), 0.0   ;;  %vm333_vm1 = vcmask (!%p145_p3), 1041408  }
   0x7   : > { %148 = sbr.rel (%p145_p3) target bundleno = 92 (0x5c), region = 28 }
   0xe   : > { %s772_s9 = smov (!%p177_p4, %s618_s9), 1 }
   0xf   : > { %s556_s13 = smul.u32 14, %s772_s9  ;;  %s555_s14 = sshll.u32 %s772_s9, 4 }
  0x10   : > { %s665_s17 = scalar_lea.vmem %s766_s2, %s555_s14 }
  0x11   : > { %s184_s20 = scalar_lea.vmem %s764_s0, %s556_s13  ;;  %202 = vst [vmem:[%s665_s17] sm:$0xff] %v628_v0  ;;  %203 = vst [vmem:[%s665_s17 + $0x8] sm:$0xff] %v628_v0  ;;  %s192_s23 = scalar_lea.vmem %s765_s1, %s556_s13 }
  0x12   : > { %v672_v1 = vld [vmem:[%s184_s20] sm:$0x3]  ;;  %v674_v2 = vld [vmem:[%s184_s20 + $0x2] sm:$0x3]  ;;  %v531_v3 = vld [vmem:[%s184_s20 + $0x6] sm:$0x3] }
  0x13   : > { %v532_v4 = vld [vmem:[%s184_s20 + $0x8] sm:$0x3]  ;;  %v533_v5 = vld [vmem:[%s184_s20 + $0xa] sm:$0x3]  ;;  %v679_v6 = vld [vmem:[%s184_s20 + $0x4] sm:$0x3] }
  0x14   : > { %v534_v7 = vld [vmem:[%s184_s20 + $0xc] sm:$0x3]  ;;  %v283_v8 = vsub.f32 %v531_v3, %v533_v5  ;;  %v537_v9 = vld [vmem:[%s192_s23 + $0x6] sm:$0x3]  ;;  %v217_v11 = vld [vmem:[%s192_s23] sm:$0x3] }
  0x15   : > { %v284_v10 = vsub.f32 %v532_v4, %v534_v7  ;;  %v230_v12 = vmul.f32 2.0, %v672_v1  ;;  %v245_v13 = vmul.f32 2.0, %v674_v2  ;;  %v297_v14 = vsub.f32 %v537_v9, %v531_v3  ;;  %v535_v15 = vld [vmem:[%s192_s23 + $0x2] sm:$0x3]  ;;  %v538_v16 = vld [vmem:[%s192_s23 + $0x8] sm:$0x3] }
  0x16   : > { %v257_v17 = vmul.f32 2.0, %v679_v6  ;;  %v285_v18 = vmul.f32 %v283_v8, %v283_v8  ;;  %v536_v19 = vld [vmem:[%s192_s23 + $0x4] sm:$0x3]  ;;  %v539_v22 = vld [vmem:[%s192_s23 + $0xa] sm:$0x3]  ;;  %v304_v28 = vsub.f32 %v538_v16, %v532_v4  ;;  %vm277_vm0 = vcmp.eq.f32.partialorder %v672_v1, 1.0 }
  0x17   : > { %v541_v20 = vadd.f32 -1.0, %v230_v12  ;;  %v543_v21 = vadd.f32 -1.0, %v245_v13  ;;  %v286_v24 = vmul.f32 %v284_v10, %v284_v10  ;;  %v298_v27 = vand.u32 2147483647, %v297_v14  ;;  %v540_v29 = vld [vmem:[%s192_s23 + $0xc] sm:$0x3] }
  0x18   : > { %v545_v23 = vadd.f32 -1.0, %v257_v17  ;;  %v312_v34 = vsub.f32 %v539_v22, %v533_v5  ;;  %vm280_vm2 = vcmp.eq.f32.partialorder %v674_v2, 1.0  ;;  %v305_v37 = vand.u32 2147483647, %v304_v28 }
  0x19   : > { %v232_v25 = vmul.f32 %v541_v20, %v217_v11  ;;  %v247_v26 = vmul.f32 %v543_v21, %v535_v15  ;;  %v684_v31 = vadd.f32 %v286_v24, %v285_v18  ;;  %v300_v36 = vmul.f32 0.5, %v298_v27 }
  0x1a   : > { %v259_v30 = vmul.f32 %v545_v23, %v536_v19  ;;  %v689_v38 = vsel %vm277_vm0, 1.0, %v628_v0  ;;  %v320_v39 = vsub.f32 %v540_v29, %v534_v7  ;;  %v691_v40 = vand.u32 2147483647, %v312_v34 }
  0x1b   : > { %v542_v32 = vmul.f32 -1.442695, %v232_v25  ;;  %v544_v33 = vmul.f32 -1.442695, %v247_v26  ;;  %582 = vrsqrt.f32 %v684_v31  ;;  %v382_v41 = vsel %vm333_vm1, %v689_v38, 0.0 }
  0x1c   : > { %v546_v35 = vmul.f32 -1.442695, %v259_v30  ;;  %v695_v42 = vsel %vm280_vm2, 1.0, %v628_v0  ;;  %v307_v43 = vmul.f32 0.5, %v305_v37  ;;  %vm290_vm3 = vcmp.eq.f32.partialorder %v684_v31, inf }
  0x1d   : > { %584 = vpow2.f32 %v542_v32  ;;  %vm299_vm4 = vcmp.lt.f32.partialorder %v298_v27, 1.0  ;;  %v301_v44 = vmul.f32 %v300_v36, %v298_v27  ;;  %v549_v45 = vadd.f32 -0.5, %v298_v27  ;;  %v406_v25 = vld [vmem:[%s665_s17] sm:$0x1]  ;;  %v424_v32 = vld [vmem:[%s665_s17 + $0x6] sm:$0x1] }
  0x1e   : > { %586 = vpow2.f32 %v544_v33  ;;  %v698_v46 = vand.u32 2147483647, %v320_v39  ;;  %v383_v47 = vrot.slane %v382_v41, 4  ;;  %v398_v48 = vsel %vm333_vm1, %v695_v42, 0.0 }
  0x1f   : > { %588 = vpow2.f32 %v546_v35  ;;  %v334_v49 = vsel %vm333_vm1, %v672_v1, 0.0  ;;  %vm292_vm5 = vcmp.eq.f32.partialorder %v684_v31, 0.0  ;;  %v315_v50 = vmul.f32 0.5, %v691_v40  ;;  %v415_v35 = vld [vmem:[%s665_s17 + $0x3] sm:$0x1] }
  0x20   : > { %v399_v51 = vrot.slane %v398_v48, 4  ;;  %v335_v52 = vrot.slane %v334_v49, 4  ;;  %v293_v53 = vand.u32 2147483648, %v684_v31  ;;  %v308_v54 = vmul.f32 %v307_v43, %v305_v37  ;;  %v430_v43 = vld [vmem:[%s665_s17 + $0x8] sm:$0x1] }
  0x21   : > { %v550_v55 = vadd.f32 -0.5, %v305_v37  ;;  %v358_v56 = vsel %vm333_vm1, %v674_v2, 0.0  ;;  %vm306_vm6 = vcmp.lt.f32.partialorder %v305_v37, 1.0  ;;  %v303_v61 = vsel %vm299_vm4, %v301_v44, %v549_v45 }
  0x22   : > { %v400_v57 = vadd.f32 %v399_v51, %v398_v48  ;;  %v336_v58 = vadd.f32 %v335_v52, %v334_v49  ;;  %v359_v59 = vrot.slane %v358_v56, 4  ;;  %v551_v62 = vadd.f32 -0.5, %v691_v40 }
  0x23   : > { %v323_v63 = vmul.f32 0.5, %v698_v46  ;;  %v384_v0 = vadd.f32 %v383_v47, %v382_v41  ;;  %v316_v5 = vmul.f32 %v315_v50, %v691_v40  ;;  %v310_v10 = vsel %vm306_vm6, %v308_v54, %v550_v55 }
  0x24   : > { %v337_v7 = vrot.slane %v336_v58, 2  ;;  %v360_v8 = vadd.f32 %v359_v59, %v358_v56  ;;  %v401_v13 = vrot.slane %v400_v57, 2  ;;  %vm314_vm7 = vcmp.lt.f32.partialorder %v691_v40, 1.0 }
  0x25   : > { %v583_v60 = vpop.eup %582  ;;  %v385_v12 = vrot.slane %v384_v0, 2  ;;  %v552_v29 = vadd.f32 -0.5, %v698_v46  ;;  %v311_v33 = vadd.f32 %v310_v10, %v303_v61  ;;  %v324_v34 = vmul.f32 %v323_v63, %v698_v46 }
  0x26   : > { %v289_v4 = vmul.f32 %v583_v60, %v684_v31  ;;  %v338_v17 = vadd.f32 %v337_v7, %v336_v58  ;;  %v361_v18 = vrot.slane %v360_v8, 2  ;;  %v402_v27 = vadd.f32 %v401_v13, %v400_v57 }
  0x27   : > { %v585_v3 = vpop.eup %584  ;;  %v386_v21 = vadd.f32 %v385_v12, %v384_v0  ;;  %v318_v39 = vsel %vm314_vm7, %v316_v5, %v551_v62  ;;  %vm322_vm8 = vcmp.lt.f32.partialorder %v698_v46, 1.0  ;;  %v243_v62 = vsub.f32 1.0, %v672_v1 }
  0x28   : > { %v587_v9 = vpop.eup %586  ;;  %v236_v11 = vadd.f32 1.0, %v585_v3  ;;  %v291_v16 = vsel %vm290_vm3, %v684_v31, %v289_v4  ;;  %v339_v23 = vrot.slane %v338_v17, 1  ;;  %v362_v24 = vadd.f32 %v361_v18, %v360_v8 }
  0x29   : > { %v589_v14 = vpop.eup %588  ;;  %v251_v15 = vadd.f32 1.0, %v587_v9  ;;  %v294_v20 = vsel %vm292_vm5, %v293_v53, %v291_v16  ;;  %v387_v26 = vrot.slane %v386_v21, 1  ;;  %v403_v37 = vrot.slane %v402_v27, 1 }
  0x2a   : > { %v263_v19 = vadd.f32 1.0, %v589_v14  ;;  %590 = vrcp.f32 %v236_v11  ;;  %v295_v22 = vmul.f32 4.0, %v294_v20  ;;  %v340_v30 = vadd.f32 %v339_v23, %v338_v17 }
  0x2b   : > { %592 = vrcp.f32 %v251_v15  ;;  %v363_v31 = vrot.slane %v362_v24, 1  ;;  %v388_v36 = vadd.f32 %v387_v26, %v386_v21  ;;  %v404_v45 = vadd.f32 %v403_v37, %v402_v27 }
  0x2c   : > { %594 = vrcp.f32 %v263_v19  ;;  %v296_v28 = vadd.f32 0.0001, %v295_v22  ;;  %v407_v40 = vadd.f32 %v406_v25, %v340_v30  ;;  %v319_v48 = vadd.f32 %v318_v39, %v311_v33  ;;  %v427_v25 = vld [vmem:[%s665_s17 + $0x7] sm:$0x1] }
  0x2d   : > { %v364_v41 = vadd.f32 %v363_v31, %v362_v24  ;;  %v425_v44 = vadd.f32 %v424_v32, %v388_v36  ;;  %v431_v49 = vadd.f32 %v430_v43, %v404_v45  ;;  %v326_v50 = vsel %vm322_vm8, %v324_v34, %v552_v29  ;;  %v412_v43 = vld [vmem:[%s665_s17 + $0x2] sm:$0x1] }
  0x2e   : > { %596 = vrcp.f32 %v296_v28  ;;  %408 = vst [vmem:[%s665_s17] sm:$0x1] %v407_v40  ;;  %v327_v56 = vadd.f32 %v326_v50, %v319_v48  ;;  %v272_v0 = vsub.f32 1.0, %v674_v2  ;;  %v274_v5 = vsub.f32 1.0, %v679_v6 }
  0x2f   : > { %v416_v47 = vadd.f32 %v415_v35, %v364_v41  ;;  %426 = vst [vmem:[%s665_s17 + $0x6] sm:$0x1] %v425_v44  ;;  %432 = vst [vmem:[%s665_s17 + $0x8] sm:$0x1] %v431_v49  ;;  %v409_v41 = vld [vmem:[%s665_s17 + $0x1] sm:$0x1] }
  0x31   : > { %417 = vst [vmem:[%s665_s17 + $0x3] sm:$0x1] %v416_v47 }
  0x34   : > { %v591_v51 = vpop.eup %590 }
  0x35   : > { %v593_v52 = vpop.eup %592  ;;  %v239_v53 = vadd.f32 0.0001, %v591_v51 }
  0x36   : > { %v595_v54 = vpop.eup %594  ;;  %v254_v55 = vadd.f32 0.0001, %v593_v52 }
  0x37   : > { %v266_v57 = vadd.f32 0.0001, %v595_v54  ;;  %598 = vlog2.f32 %v239_v53 }
  0x38   : > { %600 = vlog2.f32 %v254_v55  ;;  %v597_v46 = vpop.eup %596  ;;  %v418_v55 = vld [vmem:[%s665_s17 + $0x4] sm:$0x1] }
  0x39   : > { %602 = vlog2.f32 %v266_v57  ;;  %v329_v58 = vmul.f32 %v597_v46, %v327_v56  ;;  %v421_v56 = vld [vmem:[%s665_s17 + $0x5] sm:$0x1] }
  0x3b   : > { %v330_v59 = vmul.f32 %v695_v42, %v329_v58 }
  0x3d   : > { %v390_v60 = vsel %vm333_vm1, %v330_v59, 0.0 }
  0x3e   : > { %v391_v61 = vrot.slane %v390_v60, 4 }
  0x40   : > { %v392_v3 = vadd.f32 %v391_v61, %v390_v60 }
  0x41   : > { %v599_v63 = vpop.eup %598 }
  0x42   : > { %v601_v4 = vpop.eup %600  ;;  %v241_v7 = vmul.f32 0.6931472, %v599_v63  ;;  %v393_v10 = vrot.slane %v392_v3, 2 }
  0x43   : > { %v603_v8 = vpop.eup %602  ;;  %v256_v9 = vmul.f32 0.6931472, %v601_v4 }
  0x44   : > { %v268_v11 = vmul.f32 0.6931472, %v603_v8  ;;  %v242_v42 = vmul.f32 %v241_v7, %v672_v1  ;;  %v244_v12 = vmul.f32 %v243_v62, %v241_v7  ;;  %v394_v15 = vadd.f32 %v393_v10, %v392_v3 }
  0x45   : > { %v269_v13 = vmul.f32 %v674_v2, %v256_v9  ;;  %v273_v14 = vmul.f32 %v272_v0, %v256_v9 }
  0x46   : > { %v270_v16 = vmul.f32 %v679_v6, %v268_v11  ;;  %v275_v17 = vmul.f32 %v274_v5, %v268_v11  ;;  %v342_v18 = vsel %vm333_vm1, %v242_v42, 0.0  ;;  %v350_v19 = vsel %vm333_vm1, %v244_v12, 0.0 }
  0x47   : > { %v343_v20 = vrot.slane %v342_v18, 4  ;;  %v351_v21 = vrot.slane %v350_v19, 4  ;;  %v395_v22 = vrot.slane %v394_v15, 1 }
  0x48   : > { %v271_v23 = vadd.f32 %v270_v16, %v269_v13  ;;  %v276_v24 = vadd.f32 %v275_v17, %v273_v14 }
  0x49   : > { %v344_v1 = vadd.f32 %v343_v20, %v342_v18  ;;  %v352_v26 = vadd.f32 %v351_v21, %v350_v19  ;;  %v396_v27 = vadd.f32 %v395_v22, %v394_v15 }
  0x4a   : > { %v331_v2 = vmul.f32 %v689_v38, %v271_v23  ;;  %v332_v6 = vmul.f32 %v689_v38, %v276_v24 }
  0x4b   : > { %v345_v28 = vrot.slane %v344_v1, 2  ;;  %v353_v29 = vrot.slane %v352_v26, 2  ;;  %v428_v30 = vadd.f32 %v427_v25, %v396_v27 }
  0x4c   : > { %v366_v31 = vsel %vm333_vm1, %v331_v2, 0.0  ;;  %v374_v32 = vsel %vm333_vm1, %v332_v6, 0.0 }
  0x4d   : > { %v346_v33 = vadd.f32 %v345_v28, %v344_v1  ;;  %v354_v34 = vadd.f32 %v353_v29, %v352_v26  ;;  %v367_v35 = vrot.slane %v366_v31, 4  ;;  %v375_v36 = vrot.slane %v374_v32, 4  ;;  %429 = vst [vmem:[%s665_s17 + $0x7] sm:$0x1] %v428_v30 }
  0x4f   : > { %v347_v37 = vrot.slane %v346_v33, 1  ;;  %v355_v39 = vrot.slane %v354_v34, 1  ;;  %v368_v40 = vadd.f32 %v367_v35, %v366_v31  ;;  %v376_v38 = vadd.f32 %v375_v36, %v374_v32 }
  0x51   : > { %v348_v44 = vadd.f32 %v347_v37, %v346_v33  ;;  %v356_v45 = vadd.f32 %v355_v39, %v354_v34  ;;  %v369_v47 = vrot.slane %v368_v40, 2  ;;  %v377_v48 = vrot.slane %v376_v38, 2 }
  0x53   : > { %v410_v49 = vadd.f32 %v409_v41, %v348_v44  ;;  %v413_v50 = vadd.f32 %v412_v43, %v356_v45  ;;  %v370_v51 = vadd.f32 %v369_v47, %v368_v40  ;;  %v378_v52 = vadd.f32 %v377_v48, %v376_v38 }
  0x55   : > { %411 = vst [vmem:[%s665_s17 + $0x1] sm:$0x1] %v410_v49  ;;  %414 = vst [vmem:[%s665_s17 + $0x2] sm:$0x1] %v413_v50  ;;  %v371_v53 = vrot.slane %v370_v51, 1  ;;  %v379_v54 = vrot.slane %v378_v52, 1 }
  0x57   : > { %v372_v57 = vadd.f32 %v371_v53, %v370_v51  ;;  %v380_v46 = vadd.f32 %v379_v54, %v378_v52 }
  0x59   : > { %v419_v58 = vadd.f32 %v418_v55, %v372_v57  ;;  %v422_v59 = vadd.f32 %v421_v56, %v380_v46 }
  0x5b   : > { %420 = vst [vmem:[%s665_s17 + $0x4] sm:$0x1] %v419_v58  ;;  %423 = vst [vmem:[%s665_s17 + $0x5] sm:$0x1] %v422_v59 }
  0x5c PF: > { %s12_s11 = sadd.s32 1, %s626_s11   ;;  %s767_s9 = smov %s622_s10 }
  0x5d   : > { %p9_p5 = scmp.ge.s32.totalorder %s12_s11, 4   ;;  %s768_s10 = smov %s770_s12 }
  0x5f   :  { %11 = sbr.rel (!%p9_p5) target bundleno = 2 (0x2), region = 77 }

</bundles_post_ra>
